<compile_context>
chip_gen: v6e
topology: v6e:2x2x1
jax: 0.10.0
libtpu: 0.0.40
codegen_flags: <defaults>
</compile_context>

<pallas_src>
import math
import functools

import jax
import jax.numpy as jnp
from jax import lax
from jax.experimental import pallas as pl
from jax.experimental.pallas import tpu as pltpu


def _causal_attn_kernel(x_ref, wk_ref, wq_ref, wv_ref,
                        bk_ref, bq_ref, bv_ref,
                        wpt_ref, bp_ref,
                        out_ref, *, n_heads, d_k):
    N = x_ref.shape[1]

    # Full-width projections on the MXU: bf16 operands, f32 accumulation.
    x = x_ref[0].astype(jnp.bfloat16)                                  # (N, D)
    k = jnp.dot(x, wk_ref[...], preferred_element_type=jnp.float32) + bk_ref[...]
    q = jnp.dot(x, wq_ref[...], preferred_element_type=jnp.float32) + bq_ref[...]
    v = jnp.dot(x, wv_ref[...], preferred_element_type=jnp.float32) + bv_ref[...]

    # Fold the softmax scale into q once (cheaper than scaling the NxN scores).
    q = q * (1.0 / math.sqrt(d_k))

    # Causal mask built in-kernel: tril[-N:, -N:] is exactly (row >= col).
    row = lax.broadcasted_iota(jnp.int32, (N, N), 0)
    col = lax.broadcasted_iota(jnp.int32, (N, N), 1)
    causal = row >= col

    v_bf = v.astype(jnp.bfloat16)

    # Per-head attention (static unroll; H is small).  Softmax math stays f32.
    sa_heads = []
    for h in range(n_heads):
        lo = h * d_k
        kh = k[:, lo:lo + d_k].astype(jnp.bfloat16)
        qh = q[:, lo:lo + d_k].astype(jnp.bfloat16)
        vh = v_bf[:, lo:lo + d_k]
        # k @ q^T (k first!) to match the PyTorch module's attention_scores(k, q).
        s = lax.dot_general(kh, qh, (((1,), (1,)), ((), ())),
                            preferred_element_type=jnp.float32)        # (N, N)
        s = jnp.where(causal, s, -jnp.inf)
        s = s - jnp.max(s, axis=-1, keepdims=True)
        p = jnp.exp(s)
        p = p * pl.reciprocal(jnp.sum(p, axis=-1, keepdims=True), approx=True)
        sa_heads.append(jnp.dot(p.astype(jnp.bfloat16), vh,
                                preferred_element_type=jnp.float32))   # (N, d_k)

    sa = jnp.concatenate(sa_heads, axis=-1)                            # (N, D)

    # Single full-width output projection.
    out = jnp.dot(sa.astype(jnp.bfloat16), wpt_ref[...],
                  preferred_element_type=jnp.float32) + bp_ref[...]
    out_ref[0] = out.astype(out_ref.dtype)


def causal_self_attention(x, params, n_heads):
    """x: (B, N, D) float32.  Returns (B, N, D) float32."""
    B, N, D = x.shape
    d_k = D // n_heads

    # Head-grouped full-width weights, pre-cast to bf16 (MXU operand dtype;
    # they are DMA'd into VMEM once thanks to grid-invariant index maps).
    wk = params["wk"].astype(jnp.bfloat16)       # (D, D)
    wq = params["wq"].astype(jnp.bfloat16)
    wv = params["wv"].astype(jnp.bfloat16)
    wpt = params["wpt"].astype(jnp.bfloat16)     # (D, D) = Wp^T
    bk = params["bk"][None, :]                   # (1, D) f32
    bq = params["bq"][None, :]
    bv = params["bv"][None, :]
    bp = params["bp"][None, :]

    kernel = functools.partial(_causal_attn_kernel, n_heads=n_heads, d_k=d_k)

    return pl.pallas_call(
        kernel,
        out_shape=jax.ShapeDtypeStruct((B, N, D), jnp.float32),
        grid_spec=pltpu.PrefetchScalarGridSpec(
            num_scalar_prefetch=0,
            grid=(B,),                                          # batch only
            in_specs=[
                pl.BlockSpec((1, N, D), lambda b: (b, 0, 0)),   # x
                pl.BlockSpec((D, D),    lambda b: (0, 0)),      # Wk  (resident)
                pl.BlockSpec((D, D),    lambda b: (0, 0)),      # Wq  (resident)
                pl.BlockSpec((D, D),    lambda b: (0, 0)),      # Wv  (resident)
                pl.BlockSpec((1, D),    lambda b: (0, 0)),      # bk
                pl.BlockSpec((1, D),    lambda b: (0, 0)),      # bq
                pl.BlockSpec((1, D),    lambda b: (0, 0)),      # bv
                pl.BlockSpec((D, D),    lambda b: (0, 0)),      # Wp^T (resident)
                pl.BlockSpec((1, D),    lambda b: (0, 0)),      # bp
            ],
            out_specs=pl.BlockSpec((1, N, D), lambda b: (b, 0, 0)),
        ),
        compiler_params=pltpu.CompilerParams(
            dimension_semantics=("parallel",)),                 # 2 TCs on v7x
    )(x, wk, wq, wv, bk, bq, bv, wpt, bp)


def init_params(key, embed_dim, n_heads):
    """nn.Linear-style init; builds head-grouped full-width weight matrices."""
    d_k = embed_dim // n_heads
    keys = jax.random.split(key, 2 * n_heads + 2)
    bound = 1.0 / math.sqrt(embed_dim)

    w_heads, b_heads = [], []
    for h in range(n_heads):
        w = jax.random.uniform(keys[2 * h], (3 * d_k, embed_dim),
                               minval=-bound, maxval=bound, dtype=jnp.float32)
        b = jax.random.uniform(keys[2 * h + 1], (3 * d_k,),
                               minval=-bound, maxval=bound, dtype=jnp.float32)
        w_heads.append(w)
        b_heads.append(b)
    w_heads = jnp.stack(w_heads)            # (H, 3*d_k, D)
    b_heads = jnp.stack(b_heads)            # (H, 3*d_k)

    # PyTorch: kqv.view(B,N,d_k,3).split(1,-1) => k rows 0::3, q 1::3, v 2::3.
    # Build full (D, D) matrices whose columns are grouped by head, so
    # x @ W gives [head0 | head1 | ...] directly.
    def full_w(which):
        wh = w_heads[:, which::3, :]                                 # (H, d_k, D)
        return jnp.transpose(wh, (2, 0, 1)).reshape(embed_dim, embed_dim)

    def full_b(which):
        return b_heads[:, which::3].reshape(embed_dim)

    wp = jax.random.uniform(keys[-2], (embed_dim, embed_dim),
                            minval=-bound, maxval=bound, dtype=jnp.float32)
    bp = jax.random.uniform(keys[-1], (embed_dim,),
                            minval=-bound, maxval=bound, dtype=jnp.float32)

    params = dict(wk=full_w(0), wq=full_w(1), wv=full_w(2),
                  bk=full_b(0), bq=full_b(1), bv=full_b(2),
                  wpt=wp.T, bp=bp)
    raw = dict(w_heads=w_heads, b_heads=b_heads, wp=wp, bp=bp)
    return params, raw


def reference_forward(x, raw, mask_full, n_heads):
    """Pure-JAX f32 mirror of the PyTorch forward (for correctness checking)."""
    B, N, D = x.shape
    d_k = D // n_heads
    heads = []
    for h in range(n_heads):
        kqv_ = x @ raw["w_heads"][h].T + raw["b_heads"][h]           # (B, N, 3*d_k)
        kqv_ = kqv_.reshape(B, N, d_k, 3)
        k, q, v = kqv_[..., 0], kqv_[..., 1], kqv_[..., 2]
        A = jnp.einsum("bnd,bmd->bnm", k, q) / math.sqrt(d_k)
        m = mask_full[-N:, -N:]
        A = jnp.where(m == 0, -jnp.inf, A)
        P = jax.nn.softmax(A, axis=-1)
        heads.append(jnp.einsum("bnm,bmd->bnd", P, v))
    sa = jnp.concatenate(heads, axis=-1)
    return sa @ raw["wp"].T + raw["bp"]


if __name__ == "__main__":
    B, N = 2, 8
    embed_dim, n_heads, max_context_len = 32, 4, 16

    key = jax.random.PRNGKey(0)
    k_x, k_p = jax.random.split(key)
    x = jax.random.normal(k_x, (B, N, embed_dim), dtype=jnp.float32)

    params, raw = init_params(k_p, embed_dim, n_heads)
    mask_full = jnp.tril(jnp.ones((max_context_len, max_context_len),
                                  dtype=jnp.float32))

    out = causal_self_attention(x, params, n_heads)
    out = jax.block_until_ready(out)

    ref = reference_forward(x, raw, mask_full, n_heads)
    assert out.shape == (B, N, embed_dim)
    # bf16 MXU operands + approx reciprocal vs. an f32 reference:
    # loose-but-meaningful tolerance (structural bugs produce O(1) errors).
    assert jnp.allclose(out, ref, atol=5e-2, rtol=5e-2), "mismatch vs reference"

    print("KERNEL_OK")
</pallas_src>

<mosaic_0001>
module attributes {stable_mosaic.version = 11 : i64} {
  func.func @_causal_attn_kernel(%arg0: i32, %arg1: memref<1x8x32xf32, #tpu.memory_space<vmem>>, %arg2: memref<32x32xbf16, #tpu.memory_space<vmem>>, %arg3: memref<32x32xbf16, #tpu.memory_space<vmem>>, %arg4: memref<32x32xbf16, #tpu.memory_space<vmem>>, %arg5: memref<1x32xf32, #tpu.memory_space<vmem>>, %arg6: memref<1x32xf32, #tpu.memory_space<vmem>>, %arg7: memref<1x32xf32, #tpu.memory_space<vmem>>, %arg8: memref<32x32xbf16, #tpu.memory_space<vmem>>, %arg9: memref<1x32xf32, #tpu.memory_space<vmem>>, %arg10: memref<1x8x32xf32, #tpu.memory_space<vmem>>) attributes {dimension_semantics = [#tpu.dimension_semantics<parallel>], iteration_bounds = array<i64: 2>, scalar_prefetch = 0 : i64, scratch_operands = 0 : i64, tpu.core_type = #tpu.core_type<tc>, window_params = [{transform_indices = @transform_0, window_bounds = array<i64: 1, 8, 32>}, {pipeline_mode = #tpu.pipeline_mode<synchronous>, transform_indices = @transform_1, window_bounds = array<i64: 32, 32>}, {pipeline_mode = #tpu.pipeline_mode<synchronous>, transform_indices = @transform_2, window_bounds = array<i64: 32, 32>}, {pipeline_mode = #tpu.pipeline_mode<synchronous>, transform_indices = @transform_3, window_bounds = array<i64: 32, 32>}, {pipeline_mode = #tpu.pipeline_mode<synchronous>, transform_indices = @transform_4, window_bounds = array<i64: 1, 32>}, {pipeline_mode = #tpu.pipeline_mode<synchronous>, transform_indices = @transform_5, window_bounds = array<i64: 1, 32>}, {pipeline_mode = #tpu.pipeline_mode<synchronous>, transform_indices = @transform_6, window_bounds = array<i64: 1, 32>}, {pipeline_mode = #tpu.pipeline_mode<synchronous>, transform_indices = @transform_7, window_bounds = array<i64: 32, 32>}, {pipeline_mode = #tpu.pipeline_mode<synchronous>, transform_indices = @transform_8, window_bounds = array<i64: 1, 32>}, {transform_indices = @transform_9, window_bounds = array<i64: 1, 8, 32>}]} {
    %c0 = arith.constant 0 : index
    %c0_0 = arith.constant 0 : index
    %c0_1 = arith.constant 0 : index
    %0 = vector.load %arg1[%c0, %c0_0, %c0_1] : memref<1x8x32xf32, #tpu.memory_space<vmem>>, vector<1x8x32xf32>
    %1 = vector.shape_cast %0 : vector<1x8x32xf32> to vector<8x32xf32>
    %2 = arith.truncf %1 : vector<8x32xf32> to vector<8x32xbf16>
    %c0_2 = arith.constant 0 : index
    %c0_3 = arith.constant 0 : index
    %3 = vector.load %arg2[%c0_2, %c0_3] : memref<32x32xbf16, #tpu.memory_space<vmem>>, vector<32x32xbf16>
    %cst = arith.constant dense<0.000000e+00> : vector<8x32xf32>
    %4 = tpu.matmul %2, %3, %cst {dimension_numbers = #tpu.dot_dimension_numbers<[1], [0], [0], [1], [0, 0, 1, 1], [], []>} : vector<8x32xbf16>, vector<32x32xbf16>, vector<8x32xf32> -> vector<8x32xf32>
    %c0_4 = arith.constant 0 : index
    %c0_5 = arith.constant 0 : index
    %5 = vector.load %arg5[%c0_4, %c0_5] : memref<1x32xf32, #tpu.memory_space<vmem>>, vector<1x32xf32>
    %6 = vector.broadcast %5 : vector<1x32xf32> to vector<8x32xf32>
    %7 = arith.addf %4, %6 : vector<8x32xf32>
    %c0_6 = arith.constant 0 : index
    %c0_7 = arith.constant 0 : index
    %8 = vector.load %arg3[%c0_6, %c0_7] : memref<32x32xbf16, #tpu.memory_space<vmem>>, vector<32x32xbf16>
    %cst_8 = arith.constant dense<0.000000e+00> : vector<8x32xf32>
    %9 = tpu.matmul %2, %8, %cst_8 {dimension_numbers = #tpu.dot_dimension_numbers<[1], [0], [0], [1], [0, 0, 1, 1], [], []>} : vector<8x32xbf16>, vector<32x32xbf16>, vector<8x32xf32> -> vector<8x32xf32>
    %c0_9 = arith.constant 0 : index
    %c0_10 = arith.constant 0 : index
    %10 = vector.load %arg6[%c0_9, %c0_10] : memref<1x32xf32, #tpu.memory_space<vmem>>, vector<1x32xf32>
    %11 = vector.broadcast %10 : vector<1x32xf32> to vector<8x32xf32>
    %12 = arith.addf %9, %11 : vector<8x32xf32>
    %c0_11 = arith.constant 0 : index
    %c0_12 = arith.constant 0 : index
    %13 = vector.load %arg4[%c0_11, %c0_12] : memref<32x32xbf16, #tpu.memory_space<vmem>>, vector<32x32xbf16>
    %cst_13 = arith.constant dense<0.000000e+00> : vector<8x32xf32>
    %14 = tpu.matmul %2, %13, %cst_13 {dimension_numbers = #tpu.dot_dimension_numbers<[1], [0], [0], [1], [0, 0, 1, 1], [], []>} : vector<8x32xbf16>, vector<32x32xbf16>, vector<8x32xf32> -> vector<8x32xf32>
    %c0_14 = arith.constant 0 : index
    %c0_15 = arith.constant 0 : index
    %15 = vector.load %arg7[%c0_14, %c0_15] : memref<1x32xf32, #tpu.memory_space<vmem>>, vector<1x32xf32>
    %16 = vector.broadcast %15 : vector<1x32xf32> to vector<8x32xf32>
    %17 = arith.addf %14, %16 : vector<8x32xf32>
    %cst_16 = arith.constant 0.353553385 : f32
    %18 = vector.broadcast %cst_16 : f32 to vector<8x32xf32>
    %19 = arith.mulf %12, %18 : vector<8x32xf32>
    %20 = tpu.iota {dimensions = array<i32: 0>} : vector<8x8xi32>
    %21 = tpu.iota {dimensions = array<i32: 1>} : vector<8x8xi32>
    %22 = arith.cmpi sge, %20, %21 : vector<8x8xi32>
    %23 = arith.truncf %17 : vector<8x32xf32> to vector<8x32xbf16>
    %24 = vector.extract_strided_slice %7 {offsets = [0, 0], sizes = [8, 8], strides = [1, 1]} : vector<8x32xf32> to vector<8x8xf32>
    %25 = arith.truncf %24 : vector<8x8xf32> to vector<8x8xbf16>
    %26 = vector.extract_strided_slice %19 {offsets = [0, 0], sizes = [8, 8], strides = [1, 1]} : vector<8x32xf32> to vector<8x8xf32>
    %27 = arith.truncf %26 : vector<8x8xf32> to vector<8x8xbf16>
    %28 = vector.extract_strided_slice %23 {offsets = [0, 0], sizes = [8, 8], strides = [1, 1]} : vector<8x32xbf16> to vector<8x8xbf16>
    %cst_17 = arith.constant dense<0.000000e+00> : vector<8x8xf32>
    %29 = tpu.matmul %25, %27, %cst_17 {dimension_numbers = #tpu.dot_dimension_numbers<[1], [1], [0], [0], [0, 0, 1, 0], [], []>} : vector<8x8xbf16>, vector<8x8xbf16>, vector<8x8xf32> -> vector<8x8xf32>
    %cst_18 = arith.constant 0xFF800000 : f32
    %30 = vector.broadcast %cst_18 : f32 to vector<8x8xf32>
    %31 = arith.select %22, %29, %30 : vector<8x8xi1>, vector<8x8xf32>
    %cst_19 = arith.constant dense<0xFF800000> : vector<8xf32>
    %32 = vector.multi_reduction <maximumf>, %31, %cst_19 [1] : vector<8x8xf32> to vector<8xf32>
    %33 = vector.shape_cast %32 : vector<8xf32> to vector<8x1xf32>
    %34 = vector.broadcast %33 : vector<8x1xf32> to vector<8x8xf32>
    %35 = arith.subf %31, %34 : vector<8x8xf32>
    %36 = math.exp %35 : vector<8x8xf32>
    %cst_20 = arith.constant dense<0.000000e+00> : vector<8xf32>
    %37 = vector.multi_reduction <add>, %36, %cst_20 [1] : vector<8x8xf32> to vector<8xf32>
    %38 = vector.shape_cast %37 : vector<8xf32> to vector<8x1xf32>
    %39 = tpu.reciprocal %38 {approx = true} : vector<8x1xf32> -> vector<8x1xf32>
    %40 = vector.broadcast %39 : vector<8x1xf32> to vector<8x8xf32>
    %41 = arith.mulf %36, %40 : vector<8x8xf32>
    %42 = arith.truncf %41 : vector<8x8xf32> to vector<8x8xbf16>
    %cst_21 = arith.constant dense<0.000000e+00> : vector<8x8xf32>
    %43 = tpu.matmul %42, %28, %cst_21 {dimension_numbers = #tpu.dot_dimension_numbers<[1], [0], [0], [1], [0, 0, 1, 1], [], []>} : vector<8x8xbf16>, vector<8x8xbf16>, vector<8x8xf32> -> vector<8x8xf32>
    %44 = vector.extract_strided_slice %7 {offsets = [0, 8], sizes = [8, 8], strides = [1, 1]} : vector<8x32xf32> to vector<8x8xf32>
    %45 = arith.truncf %44 : vector<8x8xf32> to vector<8x8xbf16>
    %46 = vector.extract_strided_slice %19 {offsets = [0, 8], sizes = [8, 8], strides = [1, 1]} : vector<8x32xf32> to vector<8x8xf32>
    %47 = arith.truncf %46 : vector<8x8xf32> to vector<8x8xbf16>
    %48 = vector.extract_strided_slice %23 {offsets = [0, 8], sizes = [8, 8], strides = [1, 1]} : vector<8x32xbf16> to vector<8x8xbf16>
    %cst_22 = arith.constant dense<0.000000e+00> : vector<8x8xf32>
    %49 = tpu.matmul %45, %47, %cst_22 {dimension_numbers = #tpu.dot_dimension_numbers<[1], [1], [0], [0], [0, 0, 1, 0], [], []>} : vector<8x8xbf16>, vector<8x8xbf16>, vector<8x8xf32> -> vector<8x8xf32>
    %cst_23 = arith.constant 0xFF800000 : f32
    %50 = vector.broadcast %cst_23 : f32 to vector<8x8xf32>
    %51 = arith.select %22, %49, %50 : vector<8x8xi1>, vector<8x8xf32>
    %cst_24 = arith.constant dense<0xFF800000> : vector<8xf32>
    %52 = vector.multi_reduction <maximumf>, %51, %cst_24 [1] : vector<8x8xf32> to vector<8xf32>
    %53 = vector.shape_cast %52 : vector<8xf32> to vector<8x1xf32>
    %54 = vector.broadcast %53 : vector<8x1xf32> to vector<8x8xf32>
    %55 = arith.subf %51, %54 : vector<8x8xf32>
    %56 = math.exp %55 : vector<8x8xf32>
    %cst_25 = arith.constant dense<0.000000e+00> : vector<8xf32>
    %57 = vector.multi_reduction <add>, %56, %cst_25 [1] : vector<8x8xf32> to vector<8xf32>
    %58 = vector.shape_cast %57 : vector<8xf32> to vector<8x1xf32>
    %59 = tpu.reciprocal %58 {approx = true} : vector<8x1xf32> -> vector<8x1xf32>
    %60 = vector.broadcast %59 : vector<8x1xf32> to vector<8x8xf32>
    %61 = arith.mulf %56, %60 : vector<8x8xf32>
    %62 = arith.truncf %61 : vector<8x8xf32> to vector<8x8xbf16>
    %cst_26 = arith.constant dense<0.000000e+00> : vector<8x8xf32>
    %63 = tpu.matmul %62, %48, %cst_26 {dimension_numbers = #tpu.dot_dimension_numbers<[1], [0], [0], [1], [0, 0, 1, 1], [], []>} : vector<8x8xbf16>, vector<8x8xbf16>, vector<8x8xf32> -> vector<8x8xf32>
    %64 = vector.extract_strided_slice %7 {offsets = [0, 16], sizes = [8, 8], strides = [1, 1]} : vector<8x32xf32> to vector<8x8xf32>
    %65 = arith.truncf %64 : vector<8x8xf32> to vector<8x8xbf16>
    %66 = vector.extract_strided_slice %19 {offsets = [0, 16], sizes = [8, 8], strides = [1, 1]} : vector<8x32xf32> to vector<8x8xf32>
    %67 = arith.truncf %66 : vector<8x8xf32> to vector<8x8xbf16>
    %68 = vector.extract_strided_slice %23 {offsets = [0, 16], sizes = [8, 8], strides = [1, 1]} : vector<8x32xbf16> to vector<8x8xbf16>
    %cst_27 = arith.constant dense<0.000000e+00> : vector<8x8xf32>
    %69 = tpu.matmul %65, %67, %cst_27 {dimension_numbers = #tpu.dot_dimension_numbers<[1], [1], [0], [0], [0, 0, 1, 0], [], []>} : vector<8x8xbf16>, vector<8x8xbf16>, vector<8x8xf32> -> vector<8x8xf32>
    %cst_28 = arith.constant 0xFF800000 : f32
    %70 = vector.broadcast %cst_28 : f32 to vector<8x8xf32>
    %71 = arith.select %22, %69, %70 : vector<8x8xi1>, vector<8x8xf32>
    %cst_29 = arith.constant dense<0xFF800000> : vector<8xf32>
    %72 = vector.multi_reduction <maximumf>, %71, %cst_29 [1] : vector<8x8xf32> to vector<8xf32>
    %73 = vector.shape_cast %72 : vector<8xf32> to vector<8x1xf32>
    %74 = vector.broadcast %73 : vector<8x1xf32> to vector<8x8xf32>
    %75 = arith.subf %71, %74 : vector<8x8xf32>
    %76 = math.exp %75 : vector<8x8xf32>
    %cst_30 = arith.constant dense<0.000000e+00> : vector<8xf32>
    %77 = vector.multi_reduction <add>, %76, %cst_30 [1] : vector<8x8xf32> to vector<8xf32>
    %78 = vector.shape_cast %77 : vector<8xf32> to vector<8x1xf32>
    %79 = tpu.reciprocal %78 {approx = true} : vector<8x1xf32> -> vector<8x1xf32>
    %80 = vector.broadcast %79 : vector<8x1xf32> to vector<8x8xf32>
    %81 = arith.mulf %76, %80 : vector<8x8xf32>
    %82 = arith.truncf %81 : vector<8x8xf32> to vector<8x8xbf16>
    %cst_31 = arith.constant dense<0.000000e+00> : vector<8x8xf32>
    %83 = tpu.matmul %82, %68, %cst_31 {dimension_numbers = #tpu.dot_dimension_numbers<[1], [0], [0], [1], [0, 0, 1, 1], [], []>} : vector<8x8xbf16>, vector<8x8xbf16>, vector<8x8xf32> -> vector<8x8xf32>
    %84 = vector.extract_strided_slice %7 {offsets = [0, 24], sizes = [8, 8], strides = [1, 1]} : vector<8x32xf32> to vector<8x8xf32>
    %85 = arith.truncf %84 : vector<8x8xf32> to vector<8x8xbf16>
    %86 = vector.extract_strided_slice %19 {offsets = [0, 24], sizes = [8, 8], strides = [1, 1]} : vector<8x32xf32> to vector<8x8xf32>
    %87 = arith.truncf %86 : vector<8x8xf32> to vector<8x8xbf16>
    %88 = vector.extract_strided_slice %23 {offsets = [0, 24], sizes = [8, 8], strides = [1, 1]} : vector<8x32xbf16> to vector<8x8xbf16>
    %cst_32 = arith.constant dense<0.000000e+00> : vector<8x8xf32>
    %89 = tpu.matmul %85, %87, %cst_32 {dimension_numbers = #tpu.dot_dimension_numbers<[1], [1], [0], [0], [0, 0, 1, 0], [], []>} : vector<8x8xbf16>, vector<8x8xbf16>, vector<8x8xf32> -> vector<8x8xf32>
    %cst_33 = arith.constant 0xFF800000 : f32
    %90 = vector.broadcast %cst_33 : f32 to vector<8x8xf32>
    %91 = arith.select %22, %89, %90 : vector<8x8xi1>, vector<8x8xf32>
    %cst_34 = arith.constant dense<0xFF800000> : vector<8xf32>
    %92 = vector.multi_reduction <maximumf>, %91, %cst_34 [1] : vector<8x8xf32> to vector<8xf32>
    %93 = vector.shape_cast %92 : vector<8xf32> to vector<8x1xf32>
    %94 = vector.broadcast %93 : vector<8x1xf32> to vector<8x8xf32>
    %95 = arith.subf %91, %94 : vector<8x8xf32>
    %96 = math.exp %95 : vector<8x8xf32>
    %cst_35 = arith.constant dense<0.000000e+00> : vector<8xf32>
    %97 = vector.multi_reduction <add>, %96, %cst_35 [1] : vector<8x8xf32> to vector<8xf32>
    %98 = vector.shape_cast %97 : vector<8xf32> to vector<8x1xf32>
    %99 = tpu.reciprocal %98 {approx = true} : vector<8x1xf32> -> vector<8x1xf32>
    %100 = vector.broadcast %99 : vector<8x1xf32> to vector<8x8xf32>
    %101 = arith.mulf %96, %100 : vector<8x8xf32>
    %102 = arith.truncf %101 : vector<8x8xf32> to vector<8x8xbf16>
    %cst_36 = arith.constant dense<0.000000e+00> : vector<8x8xf32>
    %103 = tpu.matmul %102, %88, %cst_36 {dimension_numbers = #tpu.dot_dimension_numbers<[1], [0], [0], [1], [0, 0, 1, 1], [], []>} : vector<8x8xbf16>, vector<8x8xbf16>, vector<8x8xf32> -> vector<8x8xf32>
    %104 = tpu.concatenate %43, %63, %83, %103 in 1 : vector<8x8xf32>, vector<8x8xf32>, vector<8x8xf32>, vector<8x8xf32> -> vector<8x32xf32>
    %105 = arith.truncf %104 : vector<8x32xf32> to vector<8x32xbf16>
    %c0_37 = arith.constant 0 : index
    %c0_38 = arith.constant 0 : index
    %106 = vector.load %arg8[%c0_37, %c0_38] : memref<32x32xbf16, #tpu.memory_space<vmem>>, vector<32x32xbf16>
    %cst_39 = arith.constant dense<0.000000e+00> : vector<8x32xf32>
    %107 = tpu.matmul %105, %106, %cst_39 {dimension_numbers = #tpu.dot_dimension_numbers<[1], [0], [0], [1], [0, 0, 1, 1], [], []>} : vector<8x32xbf16>, vector<32x32xbf16>, vector<8x32xf32> -> vector<8x32xf32>
    %c0_40 = arith.constant 0 : index
    %c0_41 = arith.constant 0 : index
    %108 = vector.load %arg9[%c0_40, %c0_41] : memref<1x32xf32, #tpu.memory_space<vmem>>, vector<1x32xf32>
    %109 = vector.broadcast %108 : vector<1x32xf32> to vector<8x32xf32>
    %110 = arith.addf %107, %109 : vector<8x32xf32>
    %c0_42 = arith.constant 0 : index
    %c0_43 = arith.constant 0 : index
    %c0_44 = arith.constant 0 : index
    %111 = vector.load %arg10[%c0_42, %c0_43, %c0_44] : memref<1x8x32xf32, #tpu.memory_space<vmem>>, vector<1x8x32xf32>
    %112 = vector.shape_cast %111 : vector<1x8x32xf32> to vector<8x32xf32>
    %113 = vector.shape_cast %110 : vector<8x32xf32> to vector<1x8x32xf32>
    tpu.vector_store %arg10[%c0_42, %c0_43, %c0_44], %113 {strides = array<i32>} : memref<1x8x32xf32, #tpu.memory_space<vmem>>, vector<1x8x32xf32>,
    return
  }
  func.func @transform_0(%arg0: i32) -> (i32, i32, i32) {
    %c0_i32 = arith.constant 0 : i32
    %c0_i32_0 = arith.constant 0 : i32
    %c0_i32_1 = arith.constant 0 : i32
    return %arg0, %c0_i32, %c0_i32_0 : i32, i32, i32
  }
  func.func @transform_1(%arg0: i32) -> (i32, i32) {
    %c0_i32 = arith.constant 0 : i32
    %c0_i32_0 = arith.constant 0 : i32
    %c0_i32_1 = arith.constant 0 : i32
    return %c0_i32, %c0_i32_0 : i32, i32
  }
  func.func @transform_2(%arg0: i32) -> (i32, i32) {
    %c0_i32 = arith.constant 0 : i32
    %c0_i32_0 = arith.constant 0 : i32
    %c0_i32_1 = arith.constant 0 : i32
    return %c0_i32, %c0_i32_0 : i32, i32
  }
  func.func @transform_3(%arg0: i32) -> (i32, i32) {
    %c0_i32 = arith.constant 0 : i32
    %c0_i32_0 = arith.constant 0 : i32
    %c0_i32_1 = arith.constant 0 : i32
    return %c0_i32, %c0_i32_0 : i32, i32
  }
  func.func @transform_4(%arg0: i32) -> (i32, i32) {
    %c0_i32 = arith.constant 0 : i32
    %c0_i32_0 = arith.constant 0 : i32
    %c0_i32_1 = arith.constant 0 : i32
    return %c0_i32, %c0_i32_0 : i32, i32
  }
  func.func @transform_5(%arg0: i32) -> (i32, i32) {
    %c0_i32 = arith.constant 0 : i32
    %c0_i32_0 = arith.constant 0 : i32
    %c0_i32_1 = arith.constant 0 : i32
    return %c0_i32, %c0_i32_0 : i32, i32
  }
  func.func @transform_6(%arg0: i32) -> (i32, i32) {
    %c0_i32 = arith.constant 0 : i32
    %c0_i32_0 = arith.constant 0 : i32
    %c0_i32_1 = arith.constant 0 : i32
    return %c0_i32, %c0_i32_0 : i32, i32
  }
  func.func @transform_7(%arg0: i32) -> (i32, i32) {
    %c0_i32 = arith.constant 0 : i32
    %c0_i32_0 = arith.constant 0 : i32
    %c0_i32_1 = arith.constant 0 : i32
    return %c0_i32, %c0_i32_0 : i32, i32
  }
  func.func @transform_8(%arg0: i32) -> (i32, i32) {
    %c0_i32 = arith.constant 0 : i32
    %c0_i32_0 = arith.constant 0 : i32
    %c0_i32_1 = arith.constant 0 : i32
    return %c0_i32, %c0_i32_0 : i32, i32
  }
  func.func @transform_9(%arg0: i32) -> (i32, i32, i32) {
    %c0_i32 = arith.constant 0 : i32
    %c0_i32_0 = arith.constant 0 : i32
    %c0_i32_1 = arith.constant 0 : i32
    return %arg0, %c0_i32, %c0_i32_0 : i32, i32, i32
  }
}

</mosaic_0001>

<bundles_post_ra>
// kernel: tpu_custom_call.1
= control target key start
LH: loop header
LB: loop body
LE: loop exit
PB: predicated region body
PF: predicated region fallthrough
CT: control target
= control target key end

     0   :  { %s2132_s0 = inlined_call_operand.hbm [shape: f32[2,8,32], index: 0, kind: input, shape index: {}]   ;;  %s2133_s1 = inlined_call_operand.hbm [shape: bf16[32,32], index: 1, kind: input, shape index: {}]   ;;  %s2134_s2 = inlined_call_operand.hbm [shape: bf16[32,32], index: 2, kind: input, shape index: {}]   ;;  %s2135_s3 = inlined_call_operand.hbm [shape: bf16[32,32], index: 3, kind: input, shape index: {}]   ;;  %s2136_s4 = inlined_call_operand.vmem [shape: f32[1,32], index: 4, kind: input, shape index: {}]   ;;  %s2137_s5 = inlined_call_operand.vmem [shape: f32[1,32], index: 5, kind: input, shape index: {}]   ;;  %s2138_s6 = inlined_call_operand.vmem [shape: f32[1,32], index: 6, kind: input, shape index: {}]   ;;  %s2139_s7 = inlined_call_operand.hbm [shape: bf16[32,32], index: 7, kind: input, shape index: {}]   ;;  %s2140_s8 = inlined_call_operand.vmem [shape: f32[1,32], index: 8, kind: input, shape index: {}]   ;;  %s2141_s9 = inlined_call_operand.hbm [shape: f32[2,8,32], index: 9, kind: output, shape index: {}]  }
   0x1   :  { %2146 = sst [smem:[#allocation16_spill]] %s2133_s1 }
   0x2   :  { %2147 = sst [smem:[#allocation17_spill]] %s2134_s2 }
   0x3   :  { %2148 = sst [smem:[#allocation18_spill]] %s2135_s3 }
   0x4   :  { %2149 = sst [smem:[#allocation19_spill]] %s2139_s7 }
   0x5   :  { %14 = vsyncpa [#allocation3], 0 }
   0x6   :  { %16 = vsyncpa [#allocation3 + $0x1], 0 }
   0x7   :  { %17 = vsyncpa [#allocation6], 0 }
   0x8   :  { %18 = vsyncpa [#allocation9], 0 }
   0x9   :  { %19 = vsyncpa [#allocation4], 0 }
   0xa   :  { %21 = vsyncpa [#allocation4 + $0x1], 0  ;;  %s1806_s30 = smov 0   ;;  %s1808_s10 = smov 0  }
   0xb   :  { %s1810_s11 = smov 0   ;;  %s1812_s12 = smov 0  }
   0xc LB: > { %s1740_s13 = smov [#allocation5]   ;;  %s1827_s15 = sadd.s32 4294967295, %s1738_s12   ;;  %s1738_s12 = sphi %s1812_s12, %s2173_s12   ;;  %s1734_s11 = sphi %s1810_s11, %s2172_s11   ;;  %s1730_s10 = sphi %s1808_s10, %s2171_s10   ;;  %s1726_s30 = sphi %s1806_s30, %s2170_s30  }
   0xd   : > { %s264_s14 = sshll.u32 %s1740_s13, 4  ;;  %p1262_p0 = scmp.ge.s32.totalorder %s1738_s12, 1  ;;  %s265_s14 = int_to_ptr.vmem [resolvable:$true] %s264_s14 }
   0xe   : > { %p2142_p1 = scmp.eq.s32.totalorder %s1827_s15, 0  ;;  %p252_p2 = scmp.lt.s32.totalorder %s1738_s12, 3 }
   0xf   : > { %s1741_s17 = smov [#allocation8]   ;;  %s1742_s20 = smov [#allocation7]  }
  0x10   : > { %p1832_p3 = pnand %p1262_p0, %p252_p2  ;;  %s290_s18 = sshll.u32 %s1741_s17, 4  ;;  %s1845_s18 = int_to_ptr.vmem [resolvable:$true] %s290_s18 }
  0x11   : > { %s277_s21 = sshll.u32 %s1742_s20, 4  ;;  %s1545_s22 = scalar_lea.vmem %s265_s14, 256  ;;  %s1847_s21 = int_to_ptr.vmem [resolvable:$true] %s277_s21 }
  0x12   : > { %s2150_s16 = scalar_select %p1832_p3, 1, 0 }
  0x13   : > { %p1433_p5 = pneg %p1832_p3  ;;  %p1546_p8 = scmp.ne.s32.totalorder %s265_s14, %s1545_s22 }
  0x14   : > { %p1553_p11 = scmp.lt.s32.totalorder %s265_s14, %s265_s14  ;;  %p1554_p12 = scmp.lt.s32.totalorder %s1545_s22, %s1545_s22 }
  0x15   : > { %p1841_p6 = pnand %p1433_p5, %p2142_p1 }
  0x16   : > { %p1555_p13 = por %p1554_p12, %p1553_p11 }
  0x17   : > { %p1536_p7 = pneg %p1841_p6 }
  0x19   : > { %p1548_p9 = pnand %p1546_p8, %p1536_p7 }
  0x1b   : > { %p1549_p10 = pneg %p1548_p9 }
  0x1d   : > { %p1556_p0 = pnand %p1555_p13, %p1549_p10 }
  0x1f   : > { %1559 = shalt.err (!%p1556_p0)
}
  0x20   : > { %s1743_s23 = smov 64   ;;  %s1744_s24 = smov 4  }
  0x21   : > { %s2152_s1 = sld [smem:[#allocation16_spill]]  ;;  %s1571_s27 = scalar_lea.vmem %s1845_s18, 256 }
  0x22   : > { %p1572_p2 = scmp.ne.s32.totalorder %s1845_s18, %s1571_s27  ;;  %p1579_p9 = scmp.lt.s32.totalorder %s1845_s18, %s1845_s18 }
  0x23   : > { %p1580_p10 = scmp.lt.s32.totalorder %s1571_s27, %s1571_s27 }
  0x24   : > { %p1574_p5 = pnand %p1572_p2, %p1536_p7 }
  0x25   : > { %p1581_p11 = por %p1580_p10, %p1579_p9 }
  0x26   : > { %p1575_p8 = pneg %p1574_p5 }
  0x27   : > { %1436 = dma.hbm_to_vmem [thread:$0]  (!%p1841_p6), %s2152_s1, 256, %s265_s14, [#allocation6], %s1743_s23, %s1743_s23, %s1744_s24  }
  0x28   : > { %p1582_p12 = pnand %p1581_p11, %p1575_p8 }
  0x2a   : > { %1585 = shalt.err (!%p1582_p12)
}
  0x2b   : > { %s2153_s3 = sld [smem:[#allocation18_spill]]  ;;  %s1597_s13 = scalar_lea.vmem %s1847_s21, 256 }
  0x2c   : > { %p1598_p13 = scmp.ne.s32.totalorder %s1847_s21, %s1597_s13  ;;  %p1605_p5 = scmp.lt.s32.totalorder %s1847_s21, %s1847_s21 }
  0x2d   : > { %p1606_p8 = scmp.lt.s32.totalorder %s1597_s13, %s1597_s13 }
  0x2e   : > { %p1600_p0 = pnand %p1598_p13, %p1536_p7 }
  0x2f   : > { %p1607_p9 = por %p1606_p8, %p1605_p5 }
  0x30   : > { %p1601_p2 = pneg %p1600_p0 }
  0x31   : > { %1442 = dma.hbm_to_vmem [thread:$0]  (!%p1841_p6), %s2153_s3, 256, %s1845_s18, [#allocation9], %s1743_s23, %s1743_s23, %s1744_s24  }
  0x32   : > { %p1608_p10 = pnand %p1607_p9, %p1601_p2 }
  0x34   : > { %1611 = shalt.err (!%p1608_p10)
}
  0x35   : > { %s2154_s2 = sld [smem:[#allocation17_spill]]  ;;  %s1745_s18 = smov [#allocation10]  }
  0x36   : > { %s312_s20 = sshll.u32 %s1745_s18, 4  ;;  %s313_s20 = int_to_ptr.vmem [resolvable:$true] %s312_s20 }
  0x37   : > { %s1623_s22 = scalar_lea.vmem %s313_s20, 256  ;;  %p1631_p0 = scmp.lt.s32.totalorder %s313_s20, %s313_s20 }
  0x38   : > { %p1624_p11 = scmp.ne.s32.totalorder %s313_s20, %s1623_s22  ;;  %p1632_p2 = scmp.lt.s32.totalorder %s1623_s22, %s1623_s22 }
  0x3a   : > { %p1626_p12 = pnand %p1624_p11, %p1536_p7  ;;  %p1633_p5 = por %p1632_p2, %p1631_p0 }
  0x3b   : > { %1439 = dma.hbm_to_vmem [thread:$0]  (!%p1841_p6), %s2154_s2, 256, %s1847_s21, [#allocation6], %s1743_s23, %s1743_s23, %s1744_s24  }
  0x3c   : > { %p1627_p13 = pneg %p1626_p12 }
  0x3e   : > { %p1634_p8 = pnand %p1633_p5, %p1627_p13 }
  0x40   : > { %1637 = shalt.err (!%p1634_p8)
}
  0x41   : > { %s2155_s7 = sld [smem:[#allocation19_spill]]  ;;  %s1261_s19 = sadd.s32 4294967294, %s1738_s12  }
  0x42   : > { %s1907_s26 = sadd.s32 1, %s1738_s12   ;;  %s34_s28 = sadd.s32 1, %s1734_s11 }
  0x43   : > { %s31_s27 = ssub.s32 %s1738_s12, %s1907_s26  ;;  %p41_p9 = scmp.ne.s32.totalorder %s1734_s11, %s1730_s10 }
  0x44   : > { %p32_p7 = scmp.eq.s32.totalorder %s31_s27, 0  ;;  %p42_p10 = scmp.eq.s32.totalorder %s1738_s12, 0 }
  0x45   : > { %p47_p11 = scmp.ne.s32.totalorder %s1730_s10, %s1726_s30  ;;  %p239_p13 = scmp.eq.s32.totalorder %s1827_s15, 1 }
  0x46   : > { %s1918_s29 = scalar_select %p32_p7, %s1734_s11, %s34_s28  }
  0x47   : > { %1445 = dma.hbm_to_vmem [thread:$0]  (!%p1841_p6), %s2155_s7, 256, %s313_s20, [#allocation9], %s1743_s23, %s1743_s23, %s1744_s24  }
  0x48   : > { %p1920_p12 = por %p42_p10, %p41_p9  ;;  %p1926_p6 = por %p2142_p1, %p47_p11 }
  0x49   : > { %p245_p0 = scmp.eq.s32.totalorder %s1261_s19, 1  ;;  %p1458_p2 = scmp.lt.s32.totalorder %s1738_s12, 2 }
  0x4a   : > { %s2157_s23 = scalar_select %p1926_p6, 1, 0 }
  0x4b   : > { %s329_s24 = sand.u32 1, %s1734_s11   ;;  %p1933_p5 = por %p239_p13, %p41_p9 }
  0x4c   : > { %p1937_p8 = por %p245_p0, %p47_p11  ;;  %s1268_s18 = sshll.u32 %s329_s24, 3 }
  0x4d   : > { %s2158_s14 = scalar_select %p1933_p5, 1, 0 }
  0x4e   : > { %s2159_s17 = scalar_select %p1937_p8, 1, 0 }
  0x4f   : > { %s1269_s20 = sshll.u32 %s1738_s12, 7  ;;  %s333_s19 = scalar_lea.vmem [#allocation2], %s1268_s18 }
  0x50   : > { %s1945_s25 = scalar_lea.hbm %s2132_s0, %s1269_s20  ;;  %s340_s27 = sshll.u32 %s333_s19, 4  ;;  %s341_s27 = int_to_ptr.vmem [resolvable:$true] %s340_s27 }
  0x51   : > { %p1949_p7 = pnand %p1458_p2, %p1920_p12  ;;  %s330_s1 = scalar_lea.sflag [#allocation3], %s329_s24 }
  0x52   : > { %s1638_s2 = scalar_lea.hbm %s1945_s25, 128  ;;  %s1643_s21 = scalar_lea.hbm %s2132_s0, 256 }
  0x53   : > { %p1639_p9 = scmp.ne.s32.totalorder %s1945_s25, %s1638_s2  ;;  %p1640_p10 = pneg %p1949_p7 }
  0x54   : > { %p1644_p0 = scmp.lt.s32.totalorder %s1945_s25, %s2132_s0  ;;  %p1645_p12 = scmp.lt.s32.totalorder %s1643_s21, %s1638_s2 }
  0x55   : > { %p1641_p11 = pnand %p1640_p10, %p1639_p9 }
  0x56   : > { %p1646_p2 = por %p1645_p12, %p1644_p0 }
  0x57   : > { %p1642_p13 = pneg %p1641_p11 }
  0x59   : > { %p1647_p4 = pnand %p1646_p2, %p1642_p13 }
  0x5b   : > { %1650 = shalt.err (!%p1647_p4)
}
  0x5c   : > { %s1651_s13 = scalar_lea.vmem %s341_s27, 128  ;;  %s1746_s24 = smov [#allocation2]  }
  0x5d   : > { %p1652_p1 = scmp.ne.s32.totalorder %s341_s27, %s1651_s13  ;;  %s1656_s3 = sshll.u32 %s1746_s24, 4  ;;  %s1657_s3 = int_to_ptr.vmem [resolvable:$false] %s1656_s3 }
  0x5e   : > { %s1658_s7 = scalar_lea.vmem %s1657_s3, 256  ;;  %p1659_p9 = scmp.lt.s32.totalorder %s341_s27, %s1657_s3 }
  0x5f   : > { %p1654_p8 = pnand %p1652_p1, %p1640_p10  ;;  %p1660_p11 = scmp.lt.s32.totalorder %s1658_s7, %s1651_s13 }
  0x61   : > { %p1655_p5 = pneg %p1654_p8  ;;  %p1661_p6 = por %p1660_p11, %p1659_p9 }
  0x63   : > { %p1662_p3 = pnand %p1661_p6, %p1655_p5 }
  0x65   : > { %1665 = shalt.err (!%p1662_p3)
}
  0x66   : > { %1449 = dma.hbm_to_vmem [thread:$0]  (!%p1949_p7), %s1945_s25, 128, %s341_s27, %s330_s1  }
  0x67   : > { %p2161_p13 = scmp.ne.s32.totalorder %s2150_s16, 0 }
  0x68   : > { %s1970_s2 = sand.u32 (!%p2161_p13), 1, %s1730_s10   ;;  %p2162_p1 = scmp.ne.s32.totalorder (!%p2161_p13), %s2157_s23, 0 }
  0x69   : > { %349 = sbr.rel (%p2161_p13) target bundleno = 1493 (0x5d5), region = 56  ;;  %s1271_s20 = sshll.u32 (!%p2161_p13), %s1970_s2, 3 }
  0x6a   : > { %s352_s3 = scalar_lea.sflag (!%p2161_p13), [#allocation3], %s1970_s2  ;;  %s355_s7 = scalar_lea.vmem (!%p2161_p13), [#allocation2], %s1271_s20 }
  0x6e   : > { %1709 = dma.done.wait (%p2162_p1), %s352_s3, 128  }
  0x6f   : > { %1711 = vsyncadd (%p2162_p1), %s352_s3, 4294967168  ;;  %p2163_p3 = scmp.eq.s32.totalorder %s1827_s15, 0 }
  0x71   : > { %1713 = dma.done.wait (%p2163_p3), [#allocation6], 512   ;;  %p2164_p4 = pmov %p2163_p3 }
  0x72   : > { %p2165_p6 = pmov %p2163_p3 }
  0x73   : > { %1715 = vsyncadd (%p2164_p4), [#allocation6], 4294966784 }
  0x74   : > { %1717 = dma.done.wait (%p2165_p6), [#allocation9], 512   ;;  %p2166_p5 = pmov %p2163_p3 }
  0x75   : > { %v1747_v0 = vmov 0.0   ;;  %vm1748_vm0 = vmmov 0   ;;  %v1510_v1 = vld [vmem:[#allocation7 + $0x8] sm:$0xff]   ;;  %v1511_v2 = vld [vmem:[#allocation5 + $0x8] sm:$0xff]   ;;  %v1512_v3 = vld [vmem:[#allocation7] sm:$0xff]   ;;  %vm432_vm1 = vcmask 261120   ;;  %v603_v34 = vlaneseq }
  0x76   : > { %1719 = vsyncadd (%p2166_p5), [#allocation9], 4294966784  ;;  %1341 = vmatprep.subr.bf16.mxu1 %v1747_v0  ;;  %1333 = vmatprep.subr.bf16.mxu0 %v1747_v0  ;;  %v407_v4 = vld [vmem:[%s355_s7] sm:$0xff]  ;;  %v1513_v5 = vld [vmem:[#allocation5] sm:$0xff]   ;;  %vm611_vm2 = vcmask 64512   ;;  %s1749_s27 = smov 112  }
  0x77   : > { %1345 = vmatprep.mubr.msk.bf16.mxu1 %vm1748_vm0, %v1747_v0  ;;  %1337 = vmatprep.mubr.msk.bf16.mxu0 %vm1748_vm0, %v1747_v0  ;;  %v408_v6 = vpack.c.bf16 %v407_v4, %v407_v4  ;;  %v1281_v7 = vld [vmem:[%s2137_s5] ss:$0 sm:$0xff]  ;;  %s1750_s28 = smov 120   ;;  %s1751_s22 = smov 104   ;;  %v1514_v23 = vld [vmem:[#allocation8 + $0x8] sm:$0xff]   ;;  %v1515_v24 = vld [vmem:[#allocation8] sm:$0xff]  }
  0x78   : > { %1342 = vmatpush3.bf16.msra.mxu1 %v1510_v1  ;;  %1334 = vmatpush3.bf16.msra.mxu0 %v1511_v2  ;;  %v1277_v9 = vld [vmem:[%s2136_s4] ss:$0 sm:$0xff]  ;;  %v604_v35 = vshrl.u32 %v603_v34, 7  ;;  %v606_v36 = vand.u32 127, %v603_v34  ;;  %vm674_vm4 = vcmask 1043456   ;;  %s1752_s19 = smov 8  }
  0x79   : > { %1343 = vmatprep.subr.bf16.mxu1 %v1747_v0  ;;  %1335 = vmatprep.subr.bf16.mxu0 %v1747_v0  ;;  %v1285_v43 = vld [vmem:[%s2138_s6] ss:$0 sm:$0xff]  ;;  %s1753_s13 = smov 16   ;;  %s1754_s24 = smov 24   ;;  %vm1067_vm5 = vcmask 130048   ;;  %vm1069_vm6 = vcmask 195584  }
  0x7a   : > { %vm607_vm3 = vcmp.ge.s32.totalorder %v604_v35, %v606_v36  ;;  %s1302_s1 = sshll.u32 %s1827_s15, 7  ;;  %s405_s16 = scalar_lea.vmem [#allocation11], %s1271_s20 }
  0x7b   : > { %s1153_s23 = sshll.u32 %s405_s16, 4  ;;  %s1140_s15 = scalar_lea.sflag [#allocation4], %s1970_s2  ;;  %s2090_s23 = int_to_ptr.vmem [resolvable:$true] %s1153_s23 }
  0x7c   : > { %1344 = vmatpush3.bf16.msra.mxu1 %v1512_v3  ;;  %1336 = vmatpush3.bf16.msra.mxu0 %v1513_v5  ;;  %p2167_p7 = scmp.ne.s32.totalorder %s2158_s14, 0  ;;  %s1755_s20 = smov [#allocation11]  }
  0x7d   : > { %1357 = vmatprep.subr.bf16.mxu1 %v1747_v0  ;;  %1349 = vmatprep.subr.bf16.mxu0 %v1747_v0  ;;  %s1670_s21 = sshll.u32 %s1755_s20, 4  ;;  %s1671_s21 = int_to_ptr.vmem [resolvable:$false] %s1670_s21 }
  0x7e   : > { %s1672_s18 = scalar_lea.vmem %s1671_s21, 256  ;;  %p1673_p12 = scmp.lt.s32.totalorder %s2090_s23, %s1671_s21 }
  0x7f   : > { %1346 = vmatmul.mubr.msk.bf16.vlgmr.msra.gmra.mxu1 %vm432_vm1, %v408_v6  ;;  %1338 = vmatmul.mubr.msk.bf16.vlgmr.msra.gmra.mxu0 %vm432_vm1, %v408_v6 }
  0x80   : > { %1359 = vmatprep.mubr.msk.bf16.mxu1 %vm1748_vm0, %v1747_v0  ;;  %1353 = vmatprep.mubr.msk.bf16.mxu0 %vm1748_vm0, %v1747_v0 }
  0x81   : > { %1350 = vmatpush3.bf16.msra.mxu0 %v1514_v23 }
  0x82   : > { %1351 = vmatprep.subr.bf16.mxu0 %v1747_v0 }
  0x85   : > { %1352 = vmatpush3.bf16.msra.mxu0 %v1515_v24 }
  0x86   : > { %1363 = vmatprep.subr.bf16.mxu0 %v1747_v0 }
  0x88   : > { %1354 = vmatmul.mubr.msk.bf16.vlgmr.msra.gmra.mxu0 %vm432_vm1, %v408_v6 }
  0x89   : > { %1365 = vmatprep.mubr.msk.bf16.mxu0 %vm1748_vm0, %v1747_v0 }
 0x13f   : > { %v533_v8 = vpop.f32.mrf.mxu1  ;;  %v470_v11 = vpop.f32.mrf.mxu0 }
 0x140   : > { %v534_v10 = vadd.f32 %v1281_v7, %v533_v8  ;;  %v471_v14 = vadd.f32 %v1277_v9, %v470_v11 }
 0x141   : > { %v1347_v12 = vpop.f32.mrf.mxu1  ;;  %v1339_v15 = vpop.f32.mrf.mxu0 }
 0x142   : > { %v602_v13 = vmul.f32 0.35355338, %v534_v10  ;;  %v609_v20 = vpack.c.bf16 %v471_v14, %v471_v14 }
 0x143   : > { %v536_v16 = vpop.f32.mrf.mxu1  ;;  %v473_v18 = vpop.f32.mrf.mxu0 }
 0x144   : > { %v610_v17 = vpack.c.bf16 %v602_v13, %v602_v13 }
 0x145   : > { %v1348_v19 = vpop.f32.mrf.mxu1  ;;  %v1340_v22 = vpop.f32.mrf.mxu0 }
 0x146   : > { %834 = vrot.lane.b32.xlu1 %v610_v17, %s1749_s27  ;;  %722 = vrot.lane.b32.xlu0 %v610_v17, %s1750_s28  ;;  %v616_v21 = vsel %vm611_vm2, %v610_v17, 0 }
 0x147   : > { %1358 = vmatpush3.bf16.xpose.msra.mxu1 %v616_v21 }
 0x148   : > { %1369 = vmatprep.subr.bf16.mxu1 %v1747_v0  ;;  %v596_v44 = vpop.f32.mrf.mxu0 }
 0x149   : > { %v597_v45 = vadd.f32 %v1285_v43, %v596_v44 }
 0x14a   : > { %832 = vrot.lane.b32.xlu1 %v609_v20, %s1749_s27  ;;  %719 = vrot.lane.b32.xlu0 %v609_v20, %s1750_s28  ;;  %v1355_v46 = vpop.f32.mrf.mxu0 }
 0x14b   : > { %v608_v47 = vpack.c.bf16 %v597_v45, %v597_v45 }
 0x14c   : > { %v599_v48 = vpop.f32.mrf.mxu0 }
 0x14d   : > { %v676_v49 = vsel %vm674_vm4, %v608_v47, 0 }
 0x14e   : > { %943 = vrot.lane.b32.xlu1 %v609_v20, %s1751_s22  ;;  %945 = vrot.lane.b32.xlu0 %v610_v17, %s1751_s22  ;;  %v1356_v50 = vpop.f32.mrf.mxu0 }
 0x14f   : > { %1360 = vmatmul.mubr.msk.bf16.vlgmr.msra.gmra.mxu1 %vm611_vm2, %v609_v20  ;;  %1364 = vmatpush3.bf16.msra.mxu0 %v676_v49 }
 0x150   : > { %1371 = vmatprep.mubr.msk.bf16.mxu1 %vm1748_vm0, %v1747_v0  ;;  %1375 = vmatprep.subr.bf16.mxu0 %v1747_v0 }
 0x1b8   : > { %v723_v25 = vpop.permute.xlu0 %722  ;;  %v835_v27 = vpop.permute.xlu1 %834 }
 0x1b9   : > { %v728_v26 = vsel %vm611_vm2, %v723_v25, 0  ;;  %v840_v29 = vsel %vm611_vm2, %v835_v27, 0 }
 0x1ba   : > { %1370 = vmatpush3.bf16.xpose.msra.mxu1 %v728_v26 }
 0x1bb   : > { %1381 = vmatprep.subr.bf16.mxu1 %v1747_v0 }
 0x1bc   : > { %v720_v28 = vpop.permute.xlu0 %719  ;;  %v833_v31 = vpop.permute.xlu1 %832 }
 0x1c0   : > { %v946_v30 = vpop.permute.xlu0 %945  ;;  %v944_v33 = vpop.permute.xlu1 %943 }
 0x1c1   : > { %1372 = vmatmul.mubr.msk.bf16.vlgmr.msra.gmra.mxu1 %vm611_vm2, %v720_v28  ;;  %v951_v32 = vsel %vm611_vm2, %v946_v30, 0 }
 0x1c2   : > { %1382 = vmatpush3.bf16.xpose.msra.mxu1 %v840_v29  ;;  %1383 = vmatprep.mubr.msk.bf16.mxu1 %vm1748_vm0, %v1747_v0 }
 0x1c3   : > { %1393 = vmatprep.subr.bf16.mxu1 %v1747_v0 }
 0x1c9   : > { %1384 = vmatmul.mubr.msk.bf16.vlgmr.msra.gmra.mxu1 %vm611_vm2, %v833_v31 }
 0x1ca   : > { %1394 = vmatpush3.bf16.xpose.msra.mxu1 %v951_v32  ;;  %1395 = vmatprep.mubr.msk.bf16.mxu1 %vm1748_vm0, %v1747_v0 }
 0x1cb   : > { %1405 = vmatprep.subr.bf16.mxu1 %v1747_v0 }
 0x1d1   : > { %1396 = vmatmul.mubr.msk.bf16.vlgmr.msra.gmra.mxu1 %vm611_vm2, %v944_v33 }
 0x1d2   : > { %1409 = vmatprep.mubr.msk.bf16.mxu1 %vm1748_vm0, %v1747_v0 }
 0x20f   : > { %v652_v37 = vpop.f32.mrf.mxu1 }
 0x210   : > { %v658_v38 = vsel %vm607_vm3, %v652_v37, -inf }
 0x211   : > { %v1361_v39 = vpop.f32.mrf.mxu1  ;;  %v659_v40 = vsel %vm611_vm2, %v658_v38, -inf }
 0x212   : > { %660 = vmax.xlane.f32.xlu0 %v659_v40 }
 0x213   : > { %v655_v41 = vpop.f32.mrf.mxu1 }
 0x215   : > { %v1362_v42 = vpop.f32.mrf.mxu1 }
 0x281   : > { %v764_v51 = vpop.f32.mrf.mxu1 }
 0x282   : > { %v770_v52 = vsel %vm607_vm3, %v764_v51, -inf }
 0x283   : > { %v1373_v53 = vpop.f32.mrf.mxu1  ;;  %v771_v54 = vsel %vm611_vm2, %v770_v52, -inf }
 0x284   : > { %772 = vmax.xlane.f32.xlu1 %v771_v54 }
 0x285   : > { %v767_v55 = vpop.f32.mrf.mxu1 }
 0x286   : > { %v1517_v55 = vld [vmem:[#allocation10] sm:$0xff]  }
 0x287   : > { %v1374_v56 = vpop.f32.mrf.mxu1 }
 0x289   : > { %v876_v57 = vpop.f32.mrf.mxu1 }
 0x28a   : > { %v882_v58 = vsel %vm607_vm3, %v876_v57, -inf }
 0x28b   : > { %v1385_v59 = vpop.f32.mrf.mxu1  ;;  %v883_v60 = vsel %vm611_vm2, %v882_v58, -inf }
 0x28c   : > { %884 = vmax.xlane.f32.xlu0 %v883_v60 }
 0x28d   : > { %v879_v61 = vpop.f32.mrf.mxu1 }
 0x28f   : > { %v1386_v62 = vpop.f32.mrf.mxu1 }
 0x291   : > { %v987_v63 = vpop.f32.mrf.mxu1 }
 0x292   : > { %v993_v1 = vsel %vm607_vm3, %v987_v63, -inf }
 0x293   : > { %v1397_v2 = vpop.f32.mrf.mxu1  ;;  %v994_v3 = vsel %vm611_vm2, %v993_v1, -inf }
 0x294   : > { %995 = vmax.xlane.f32.xlu0 %v994_v3 }
 0x295   : > { %v990_v4 = vpop.f32.mrf.mxu1 }
 0x297   : > { %v1398_v5 = vpop.f32.mrf.mxu1 }
 0x29b   : > { %v661_v6 = vpop.xlane.xlu0 %660 }
 0x29c   : > { %v662_v7 = vsub.f32 %v658_v38, %v661_v6 }
 0x29e   : > { %v663_v8 = vmul.f32 1.442695, %v662_v7 }
 0x2a0   : > { %1518 = vpow2.f32 %v663_v8 }
 0x2ad   : > { %v1519_v9 = vpop.eup %1518 }
 0x2ae   : > { %v665_v10 = vsel %vm611_vm2, %v1519_v9, 0.0 }
 0x2af   : > { %666 = vadd.xlane.f32.xlu1 %v665_v10 }
 0x2c0   : > { %784 = vrot.lane.b32.xlu1 %v608_v47, %s1750_s28  ;;  %s2088_s28 = scalar_lea.hbm %s2141_s9, %s1302_s1 }
 0x30d   : > { %v773_v11 = vpop.xlane.xlu1 %772 }
 0x30e   : > { %v774_v12 = vsub.f32 %v770_v52, %v773_v11  ;;  %v1516_v52 = vld [vmem:[#allocation10 + $0x8] sm:$0xff]  }
 0x30f   : > { %1406 = vmatpush3.bf16.msra.mxu1 %v1516_v52 }
 0x310   : > { %v775_v13 = vmul.f32 1.442695, %v774_v12  ;;  %1407 = vmatprep.subr.bf16.mxu1 %v1747_v0 }
 0x312   : > { %1520 = vpow2.f32 %v775_v13 }
 0x313   : > { %1408 = vmatpush3.bf16.msra.mxu1 %v1517_v55 }
 0x315   : > { %v885_v14 = vpop.xlane.xlu0 %884 }
 0x316   : > { %v886_v15 = vsub.f32 %v882_v58, %v885_v14 }
 0x318   : > { %v887_v16 = vmul.f32 1.442695, %v886_v15 }
 0x31a   : > { %1522 = vpow2.f32 %v887_v16 }
 0x31d   : > { %v996_v17 = vpop.xlane.xlu0 %995 }
 0x31e   : > { %v997_v18 = vsub.f32 %v993_v1, %v996_v17 }
 0x31f   : > { %v1521_v19 = vpop.eup %1520 }
 0x320   : > { %v998_v20 = vmul.f32 1.442695, %v997_v18  ;;  %v777_v21 = vsel %vm611_vm2, %v1521_v19, 0.0 }
 0x321   : > { %778 = vadd.xlane.f32.xlu0 %v777_v21 }
 0x322   : > { %1524 = vpow2.f32 %v998_v20 }
 0x327   : > { %v1523_v22 = vpop.eup %1522 }
 0x328   : > { %v889_v23 = vsel %vm611_vm2, %v1523_v22, 0.0 }
 0x329   : > { %890 = vadd.xlane.f32.xlu1 %v889_v23 }
 0x32f   : > { %v1525_v24 = vpop.eup %1524 }
 0x330   : > { %v1000_v25 = vsel %vm611_vm2, %v1525_v24, 0.0 }
 0x331   : > { %1001 = vadd.xlane.f32.xlu0 %v1000_v25 }
 0x338   : > { %v667_v26 = vpop.xlane.xlu1 %666 }
 0x339   : > { %1526 = vrcp.f32 %v667_v26 }
 0x33a   : > { %1006 = vrot.lane.b32.xlu1 %v608_v47, %s1751_s22  ;;  %s1666_s22 = scalar_lea.vmem %s2090_s23, 128 }
 0x33b   : > { %p1667_p8 = scmp.ne.s32.totalorder %s2090_s23, %s1666_s22  ;;  %p1674_p2 = scmp.lt.s32.totalorder %s1672_s18, %s1666_s22 }
 0x33c   : > { %v785_v28 = vpop.permute.xlu1 %784 }
 0x33d   : > { %v790_v31 = vsel %vm674_vm4, %v785_v28, 0  ;;  %p1668_p10 = pnand %p1667_p8, %p2167_p7  ;;  %p1675_p9 = por %p1674_p2, %p1673_p12 }
 0x33f   : > { %p1669_p0 = pneg %p1668_p10 }
 0x341   : > { %p1676_p11 = pnand %p1675_p9, %p1669_p0 }
 0x346   : > { %v1527_v27 = vpop.eup %1526 }
 0x347   : > { %895 = vrot.lane.b32.xlu0 %v608_v47, %s1749_s27  ;;  %v669_v29 = vmul.f32 %v1527_v27, %v1519_v9  ;;  %v1297_v9 = vld [vmem:[%s2140_s8] ss:$0 sm:$0xff] }
 0x349   : > { %v670_v30 = vpack.c.bf16 %v669_v29, %v669_v29 }
 0x34b   : > { %1366 = vmatmul.mubr.msk.bf16.vlgmr.msra.gmra.mxu0 %vm611_vm2, %v670_v30 }
 0x34c   : > { %1376 = vmatpush3.bf16.msra.mxu0 %v790_v31  ;;  %1377 = vmatprep.mubr.msk.bf16.mxu0 %vm1748_vm0, %v1747_v0 }
 0x34d   : > { %1387 = vmatprep.subr.bf16.mxu0 %v1747_v0 }
 0x3aa   : > { %v779_v32 = vpop.xlane.xlu0 %778 }
 0x3ab   : > { %1528 = vrcp.f32 %v779_v32 }
 0x3b2   : > { %v891_v33 = vpop.xlane.xlu1 %890 }
 0x3b3   : > { %1530 = vrcp.f32 %v891_v33 }
 0x3b6   : > { %v1007_v42 = vpop.permute.xlu1 %1006 }
 0x3b7   : > { %v1012_v44 = vsel %vm674_vm4, %v1007_v42, 0 }
 0x3b8   : > { %v1529_v34 = vpop.eup %1528 }
 0x3b9   : > { %v781_v35 = vmul.f32 %v1529_v34, %v1521_v19 }
 0x3ba   : > { %v1002_v36 = vpop.xlane.xlu0 %1001 }
 0x3bb   : > { %1532 = vrcp.f32 %v1002_v36  ;;  %v782_v37 = vpack.c.bf16 %v781_v35, %v781_v35 }
 0x3bd   : > { %1378 = vmatmul.mubr.msk.bf16.vlgmr.msra.gmra.mxu0 %vm611_vm2, %v782_v37 }
 0x3be   : > { %v896_v38 = vpop.permute.xlu0 %895  ;;  %1389 = vmatprep.mubr.msk.bf16.mxu0 %vm1748_vm0, %v1747_v0 }
 0x3bf   : > { %v901_v39 = vsel %vm674_vm4, %v896_v38, 0 }
 0x3c0   : > { %v1531_v40 = vpop.eup %1530  ;;  %1388 = vmatpush3.bf16.msra.mxu0 %v901_v39 }
 0x3c1   : > { %1399 = vmatprep.subr.bf16.mxu0 %v1747_v0  ;;  %v893_v41 = vmul.f32 %v1531_v40, %v1523_v22 }
 0x3c3   : > { %v894_v43 = vpack.c.bf16 %v893_v41, %v893_v41 }
 0x3c5   : > { %1390 = vmatmul.mubr.msk.bf16.vlgmr.msra.gmra.mxu0 %vm611_vm2, %v894_v43 }
 0x3c6   : > { %1400 = vmatpush3.bf16.msra.mxu0 %v1012_v44  ;;  %1401 = vmatprep.mubr.msk.bf16.mxu0 %vm1748_vm0, %v1747_v0 }
 0x3c8   : > { %v1533_v45 = vpop.eup %1532 }
 0x3c9   : > { %v1004_v46 = vmul.f32 %v1533_v45, %v1525_v24 }
 0x3cb   : > { %v1005_v47 = vpack.c.bf16 %v1004_v46, %v1004_v46 }
 0x3cd   : > { %1402 = vmatmul.mubr.msk.bf16.vlgmr.msra.gmra.mxu0 %vm611_vm2, %v1005_v47 }
 0x40b   : > { %v712_v48 = vpop.f32.mrf.mxu0 }
 0x40d   : > { %v1367_v49 = vpop.f32.mrf.mxu0 }
 0x40f   : > { %v715_v50 = vpop.f32.mrf.mxu0 }
 0x411   : > { %v1368_v51 = vpop.f32.mrf.mxu0 }
 0x47d   : > { %v826_v53 = vpop.f32.mrf.mxu0 }
 0x47e   : > { %1055 = vrot.lane.b32.xlu1 %v826_v53, %s1752_s19 }
 0x47f   : > { %v1379_v54 = vpop.f32.mrf.mxu0 }
 0x481   : > { %v829_v56 = vpop.f32.mrf.mxu0 }
 0x483   : > { %v1380_v57 = vpop.f32.mrf.mxu0 }
 0x485   : > { %v937_v58 = vpop.f32.mrf.mxu0 }
 0x486   : > { %1059 = vrot.lane.b32.xlu0 %v937_v58, %s1753_s13 }
 0x487   : > { %v1391_v59 = vpop.f32.mrf.mxu0 }
 0x489   : > { %v940_v60 = vpop.f32.mrf.mxu0 }
 0x48b   : > { %v1392_v61 = vpop.f32.mrf.mxu0 }
 0x48d   : > { %v1048_v62 = vpop.f32.mrf.mxu0 }
 0x48e   : > { %1063 = vrot.lane.b32.xlu1 %v1048_v62, %s1754_s24 }
 0x48f   : > { %v1403_v0 = vpop.f32.mrf.mxu0 }
 0x491   : > { %v1051_v63 = vpop.f32.mrf.mxu0 }
 0x493   : > { %v1404_v1 = vpop.f32.mrf.mxu0 }
 0x4f0   : > { %v1056_v2 = vpop.permute.xlu1 %1055 }
 0x4f1   : > { %v1066_v4 = vsel %vm611_vm2, %v712_v48, %v1056_v2 }
 0x4f8   : > { %v1060_v3 = vpop.permute.xlu0 %1059 }
 0x4f9   : > { %v1068_v5 = vsel %vm1067_vm5, %v1066_v4, %v1060_v3 }
 0x500   : > { %v1064_v6 = vpop.permute.xlu1 %1063 }
 0x501   : > { %v1070_v7 = vsel %vm1069_vm6, %v1068_v5, %v1064_v6 }
 0x502   : > { %v1071_v8 = vpack.c.bf16 %v1070_v7, %v1070_v7 }
 0x504   : > { %1410 = vmatmul.mubr.msk.bf16.vlgmr.msra.gmra.mxu1 %vm432_vm1, %v1071_v8 }
 0x5c4   : > { %v1132_v10 = vpop.f32.mrf.mxu1 }
 0x5c5   : > { %v1133_v11 = vadd.f32 %v1297_v9, %v1132_v10 }
 0x5c6   : > { %v1411_v12 = vpop.f32.mrf.mxu1 }
 0x5c7   : > { %1138 = vst.msk [vmem:[%s405_s16] sm:$0xff] %vm432_vm1, %v1133_v11 }
 0x5c8   : > { %v1135_v13 = vpop.f32.mrf.mxu1 }
 0x5c9   : > { %1679 = shalt.err (!%p1676_p11)
}
 0x5ca   : > { %s1680_s19 = scalar_lea.hbm %s2088_s28, 128  ;;  %s1684_s24 = scalar_lea.hbm %s2141_s9, 256 }
 0x5cb   : > { %p1681_p13 = scmp.ne.s32.totalorder %s2088_s28, %s1680_s19  ;;  %p1685_p4 = scmp.lt.s32.totalorder %s2088_s28, %s2141_s9 }
 0x5cc   : > { %p1686_p6 = scmp.lt.s32.totalorder %s1684_s24, %s1680_s19 }
 0x5cd   : > { %p1682_p1 = pnand %p1681_p13, %p2167_p7 }
 0x5ce   : > { %p1687_p5 = por %p1686_p6, %p1685_p4 }
 0x5cf   : > { %p1683_p3 = pneg %p1682_p1 }
 0x5d1   : > { %p1688_p8 = pnand %p1687_p5, %p1683_p3 }
 0x5d3   : > { %1691 = shalt.err (!%p1688_p8)
}
 0x5d4   : > { %1431 = dma.vmem_to_hbm [thread:$0]  (%p2167_p7), %s2090_s23, 128, %s2088_s28, %s1140_s15   ;;  %v1412_v14 = vpop.f32.mrf.mxu1 }
 0x5d5 PF: > { %s1165_s1 = sand.u32 1, %s1726_s30   ;;  %p2168_p10 = scmp.ne.s32.totalorder %s2159_s17, 0 }
 0x5d6   : > { %p2169_p0 = scmp.ge.s32.totalorder %s1738_s12, 2  ;;  %s1166_s16 = scalar_lea.sflag [#allocation4], %s1165_s1 }
 0x5d8   : > { %p1451_p12 = pnand %p2169_p0, %p2168_p10 }
 0x5da   : > { %p1452_p2 = pneg %p1451_p12 }
 0x5dc   : > { %1721 = dma.done.wait (%p1452_p2), %s1166_s16, 128  }
 0x5dd   : > { %1723 = vsyncadd (%p1452_p2), %s1166_s16, 4294967168  ;;  %p24_p9 = scmp.ge.s32.totalorder %s1907_s26, 4   ;;  %s2170_s30 = smov %s1730_s10 }
 0x5de   : > { %s2171_s10 = smov %s1734_s11  ;;  %s2172_s11 = smov %s1918_s29 }
 0x5df   : > { %s2173_s12 = smov %s1907_s26  ;;  %26 = sbr.rel (!%p24_p9) target bundleno = 12 (0xc), region = 117 }
 0x5e4   :  { %1171 = vsyncpa [#allocation3], 1 }
 0x5e5   :  { %1173 = vsyncpa [#allocation3 + $0x1], 1 }
 0x5e6   :  { %1174 = vsyncpa [#allocation6], 1 }
 0x5e7   :  { %1175 = vsyncpa [#allocation9], 1 }
 0x5e8   :  { %1176 = vsyncpa [#allocation4], 1 }
 0x5e9   :  { %1178 = vsyncpa [#allocation4 + $0x1], 1 }

</bundles_post_ra>
